<compile_context>
chip_gen: v6e
topology: v6e:2x2x1
jax: 0.10.0
libtpu: 0.0.40
codegen_flags: <defaults>
</compile_context>

<pallas_src>
import math
from functools import partial

import jax
import jax.numpy as jnp
from jax.experimental import pallas as pl
from jax.experimental.pallas import tpu as pltpu

_HALF_LOG_2PI = 0.5 * math.log(2.0 * math.pi)


# ----------------------------------------------------------------------------
# Fused kernel: hoisted input projection + unrolled LSTM recurrence + policy head.
# ----------------------------------------------------------------------------
def _actor_kernel(T, B, H, A, B_pad, OUT_W,
                  x_ref, wih_ref, whh_ref, bg_ref,
                  wfc_ref, bfc_ref, whead_ref, bhead_ref, noise_ref,
                  out_ref):
    f32 = jnp.float32
    bf16 = jnp.bfloat16

    # ---- One-shot input projection for ALL timesteps (off the serial chain). ----
    # x is time-major & pre-flattened: (T*B, D).  Gate bias folded in here once.
    x_proj = jnp.dot(x_ref[...].astype(bf16), wih_ref[...].astype(bf16),
                     preferred_element_type=f32) + bg_ref[...]          # (T*B, 4H)

    w_hh = whh_ref[...].astype(bf16)                                    # (H, 4H), cast once

    h = jnp.zeros((B, H), f32)
    c = jnp.zeros((B, H), f32)
    # Static unroll (T is small & known at trace time).  Do NOT turn this into a grid
    # axis or a non-unrolled fori_loop (per-step pipeline overhead / hidden from LLO).
    for t in range(T):
        pre = x_proj[t * B:(t + 1) * B, :] + jnp.dot(
            h.astype(bf16), w_hh, preferred_element_type=f32)           # (B, 4H)
        # Two EUP passes on the packed pre-activation, gates via lane slices (XLU slot).
        sg = jax.nn.sigmoid(pre)
        th = jnp.tanh(pre)
        i_g = sg[:, 0 * H:1 * H]
        f_g = sg[:, 1 * H:2 * H]
        g_g = th[:, 2 * H:3 * H]
        o_g = sg[:, 3 * H:4 * H]
        c = f_g * c + i_g * g_g
        h = o_g * jnp.tanh(c)

    # ---- Policy head: fc -> relu -> fused [mu | sigma] matmul. ----
    z = jnp.dot(h.astype(bf16), wfc_ref[...].astype(bf16),
                preferred_element_type=f32) + bfc_ref[...]
    z = jnp.maximum(z, 0.0)                                             # ReLU
    head = jnp.dot(z.astype(bf16), whead_ref[...].astype(bf16),
                   preferred_element_type=f32) + bhead_ref[...]         # (B, 2A)
    mu = jnp.tanh(head[:, :A])
    sigma = jax.nn.softplus(head[:, A:]) + 1e-5

    noise = noise_ref[...]                                              # (B, A)
    action = mu + sigma * noise
    # Normal(mu, sigma).log_prob(action): (action - mu)/sigma == noise by construction,
    # so use the closed form (no divide needed in the epilogue).
    logp_elem = -0.5 * noise * noise - jnp.log(sigma) - f32(_HALF_LOG_2PI)
    logp = jnp.sum(logp_elem, axis=1, keepdims=True)                    # (B, 1)
    logp_b = jnp.broadcast_to(logp, (B, A))

    # ---- Single lane-dense, sublane-padded slab -> one unmasked output store. ----
    pieces = [mu, sigma, action, logp_b]
    lane_pad = OUT_W - 4 * A
    if lane_pad > 0:
        pieces.append(jnp.zeros((B, lane_pad), f32))
    packed = jnp.concatenate(pieces, axis=1)                            # (B, OUT_W)
    if B_pad > B:
        packed = jnp.concatenate(
            [packed, jnp.zeros((B_pad - B, OUT_W), f32)], axis=0)       # (B_pad, OUT_W)
    out_ref[...] = packed


def _build_actor_call(T, B, H, A):
    B_pad = ((B + 7) // 8) * 8            # sublane-pad output rows
    OUT_W = ((4 * A + 127) // 128) * 128  # lane-dense output width
    kernel = partial(_actor_kernel, T, B, H, A, B_pad, OUT_W)
    vmem = pl.BlockSpec(memory_space=pltpu.MemorySpace.VMEM)
    call = pl.pallas_call(
        kernel,
        out_shape=jax.ShapeDtypeStruct((B_pad, OUT_W), jnp.float32),
        in_specs=[vmem] * 9,              # everything resident in VMEM, single invocation
        out_specs=vmem,
    )
    return call, B_pad, OUT_W


# ----------------------------------------------------------------------------
# ActorNetwork wrapper (jitted so input transpose / output slicing fuse around the call).
# ----------------------------------------------------------------------------
@jax.jit
def actor_network_forward(s_btd, params, noise):
    B, T, D = s_btd.shape
    A = noise.shape[1]
    H = params["w_hh_t"].shape[0]

    # Time-major, pre-flattened sequence: per-step rows are contiguous sublane slabs and
    # the one-shot input projection needs no in-kernel relayout.
    x_flat = jnp.transpose(s_btd, (1, 0, 2)).reshape(T * B, D)

    call, _, _ = _build_actor_call(T, B, H, A)
    packed = call(x_flat,
                  params["w_ih_t"], params["w_hh_t"], params["b_g"],
                  params["w_fc_t"], params["b_fc"],
                  params["w_head_t"], params["b_head"],
                  noise)

    mu = packed[:B, 0 * A:1 * A]
    sigma = packed[:B, 1 * A:2 * A]
    action = packed[:B, 2 * A:3 * A]
    log_prob = packed[:B, 3 * A:3 * A + 1]
    return mu, sigma, action, log_prob


# ----------------------------------------------------------------------------
# Parameter construction (PyTorch layouts) + kernel-layout packing + f32 reference.
# ----------------------------------------------------------------------------
def init_raw_params(key, d_in, h_lstm, h_policy, a_dim):
    ks = jax.random.split(key, 10)

    def uni(k, shape, fan):
        bound = 1.0 / math.sqrt(fan)
        return jax.random.uniform(k, shape, jnp.float32, -bound, bound)

    # PyTorch layouts: W_ih [4H, D], W_hh [4H, H], biases [4H]; gate order i, f, g, o.
    return {
        "w_ih": uni(ks[0], (4 * h_lstm, d_in), h_lstm),
        "w_hh": uni(ks[1], (4 * h_lstm, h_lstm), h_lstm),
        "b_ih": uni(ks[2], (4 * h_lstm,), h_lstm),
        "b_hh": uni(ks[3], (4 * h_lstm,), h_lstm),
        "w_fc": uni(ks[4], (h_policy, h_lstm), h_lstm),
        "b_fc": uni(ks[5], (h_policy,), h_lstm),
        "w_mu": uni(ks[6], (a_dim, h_policy), h_policy),
        "b_mu": uni(ks[7], (a_dim,), h_policy),
        "w_sg": uni(ks[8], (a_dim, h_policy), h_policy),
        "b_sg": uni(ks[9], (a_dim,), h_policy),
    }


def pack_params(raw):
    # Lane-packed LSTM layout: (., 4H) with i|f|g|o along lanes (4H == 128 for H == 32),
    # gate bias pre-summed, fc / [mu|sigma] head weights pre-transposed & fused.
    return {
        "w_ih_t": raw["w_ih"].T,                                                 # (D, 4H)
        "w_hh_t": raw["w_hh"].T,                                                 # (H, 4H)
        "b_g": (raw["b_ih"] + raw["b_hh"])[None, :],                             # (1, 4H)
        "w_fc_t": raw["w_fc"].T,                                                 # (H, Hd)
        "b_fc": raw["b_fc"][None, :],                                            # (1, Hd)
        "w_head_t": jnp.concatenate([raw["w_mu"].T, raw["w_sg"].T], axis=1),     # (Hd, 2A)
        "b_head": jnp.concatenate([raw["b_mu"], raw["b_sg"]])[None, :],          # (1, 2A)
    }


def reference_forward(raw, s, noise):
    """Pure-JAX f32 reference of the module semantics (for a tolerance check)."""
    B, T, _ = s.shape
    H = raw["w_hh"].shape[1]
    h = jnp.zeros((B, H), jnp.float32)
    c = jnp.zeros((B, H), jnp.float32)
    for t in range(T):
        gates = (s[:, t, :] @ raw["w_ih"].T + raw["b_ih"]
                 + h @ raw["w_hh"].T + raw["b_hh"])
        i, f, g, o = jnp.split(gates, 4, axis=1)
        c = jax.nn.sigmoid(f) * c + jax.nn.sigmoid(i) * jnp.tanh(g)
        h = jax.nn.sigmoid(o) * jnp.tanh(c)
    z = jax.nn.relu(h @ raw["w_fc"].T + raw["b_fc"])
    mu = jnp.tanh(z @ raw["w_mu"].T + raw["b_mu"])
    sigma = jax.nn.softplus(z @ raw["w_sg"].T + raw["b_sg"]) + 1e-5
    action = mu + sigma * noise
    logp = jnp.sum(-0.5 * ((action - mu) / sigma) ** 2 - jnp.log(sigma)
                   - _HALF_LOG_2PI, axis=1, keepdims=True)
    return mu, sigma, action, logp


if __name__ == "__main__":
    B, T, D_IN = 2, 8, 8          # batch, sequence length, state dim
    H_LSTM, H_POL, A_DIM = 32, 32, 4

    key = jax.random.PRNGKey(0)
    k_param, k_state, k_noise = jax.random.split(key, 3)

    raw = init_raw_params(k_param, D_IN, H_LSTM, H_POL, A_DIM)
    params = pack_params(raw)
    s = jax.random.normal(k_state, (B, T, D_IN), jnp.float32)
    noise = jax.random.normal(k_noise, (B, A_DIM), jnp.float32)   # reparam. sample noise

    mu, sigma, action, log_prob = actor_network_forward(s, params, noise)
    jax.block_until_ready((mu, sigma, action, log_prob))

    assert mu.shape == (B, A_DIM)
    assert sigma.shape == (B, A_DIM)
    assert action.shape == (B, A_DIM)
    assert log_prob.shape == (B, 1)
    assert bool(jnp.all(sigma > 0.0))
    assert bool(jnp.all(jnp.isfinite(log_prob)))

    # Loose-tolerance comparison vs. the pure-f32 reference (bf16 MXU operands drift slightly).
    r_mu, r_sigma, r_action, r_logp = reference_forward(raw, s, noise)
    for got, ref in ((mu, r_mu), (sigma, r_sigma), (action, r_action), (log_prob, r_logp)):
        assert float(jnp.max(jnp.abs(got - ref))) < 0.1

    print("KERNEL_OK")
</pallas_src>

<mosaic_0001>
module attributes {stable_mosaic.version = 11 : i64} {
  func.func @_actor_kernel(%arg0: memref<16x8xf32, #tpu.memory_space<vmem>>, %arg1: memref<8x128xf32, #tpu.memory_space<vmem>>, %arg2: memref<32x128xf32, #tpu.memory_space<vmem>>, %arg3: memref<1x128xf32, #tpu.memory_space<vmem>>, %arg4: memref<32x32xf32, #tpu.memory_space<vmem>>, %arg5: memref<1x32xf32, #tpu.memory_space<vmem>>, %arg6: memref<32x8xf32, #tpu.memory_space<vmem>>, %arg7: memref<1x8xf32, #tpu.memory_space<vmem>>, %arg8: memref<2x4xf32, #tpu.memory_space<vmem>>, %arg9: memref<8x128xf32, #tpu.memory_space<vmem>>) attributes {dimension_semantics = [], scalar_prefetch = 0 : i64, scratch_operands = 0 : i64, tpu.core_type = #tpu.core_type<tc>} {
    %c0 = arith.constant 0 : index
    %c0_0 = arith.constant 0 : index
    %0 = vector.load %arg0[%c0, %c0_0] : memref<16x8xf32, #tpu.memory_space<vmem>>, vector<16x8xf32>
    %1 = arith.truncf %0 : vector<16x8xf32> to vector<16x8xbf16>
    %c0_1 = arith.constant 0 : index
    %c0_2 = arith.constant 0 : index
    %2 = vector.load %arg1[%c0_1, %c0_2] : memref<8x128xf32, #tpu.memory_space<vmem>>, vector<8x128xf32>
    %3 = arith.truncf %2 : vector<8x128xf32> to vector<8x128xbf16>
    %cst = arith.constant dense<0.000000e+00> : vector<16x128xf32>
    %4 = tpu.matmul %1, %3, %cst {dimension_numbers = #tpu.dot_dimension_numbers<[1], [0], [0], [1], [0, 0, 1, 1], [], []>} : vector<16x8xbf16>, vector<8x128xbf16>, vector<16x128xf32> -> vector<16x128xf32>
    %c0_3 = arith.constant 0 : index
    %c0_4 = arith.constant 0 : index
    %5 = vector.load %arg3[%c0_3, %c0_4] : memref<1x128xf32, #tpu.memory_space<vmem>>, vector<1x128xf32>
    %6 = vector.broadcast %5 : vector<1x128xf32> to vector<16x128xf32>
    %7 = arith.addf %4, %6 : vector<16x128xf32>
    %c0_5 = arith.constant 0 : index
    %c0_6 = arith.constant 0 : index
    %8 = vector.load %arg2[%c0_5, %c0_6] : memref<32x128xf32, #tpu.memory_space<vmem>>, vector<32x128xf32>
    %9 = arith.truncf %8 : vector<32x128xf32> to vector<32x128xbf16>
    %cst_7 = arith.constant 0.000000e+00 : f32
    %10 = vector.broadcast %cst_7 : f32 to vector<2x32xf32>
    %cst_8 = arith.constant 0.000000e+00 : f32
    %11 = vector.broadcast %cst_8 : f32 to vector<2x32xf32>
    %12 = vector.extract_strided_slice %7 {offsets = [0, 0], sizes = [2, 128], strides = [1, 1]} : vector<16x128xf32> to vector<2x128xf32>
    %13 = arith.truncf %10 : vector<2x32xf32> to vector<2x32xbf16>
    %cst_9 = arith.constant dense<0.000000e+00> : vector<2x128xf32>
    %14 = tpu.matmul %13, %9, %cst_9 {dimension_numbers = #tpu.dot_dimension_numbers<[1], [0], [0], [1], [0, 0, 1, 1], [], []>} : vector<2x32xbf16>, vector<32x128xbf16>, vector<2x128xf32> -> vector<2x128xf32>
    %15 = arith.addf %12, %14 : vector<2x128xf32>
    %16 = arith.negf %15 : vector<2x128xf32>
    %17 = math.exp %16 : vector<2x128xf32>
    %cst_10 = arith.constant 1.000000e+00 : f32
    %18 = vector.broadcast %cst_10 : f32 to vector<2x128xf32>
    %19 = arith.addf %18, %17 : vector<2x128xf32>
    %20 = arith.divf %18, %19 : vector<2x128xf32>
    %21 = math.tanh %15 : vector<2x128xf32>
    %22 = vector.extract_strided_slice %20 {offsets = [0, 0], sizes = [2, 32], strides = [1, 1]} : vector<2x128xf32> to vector<2x32xf32>
    %23 = vector.extract_strided_slice %20 {offsets = [0, 32], sizes = [2, 32], strides = [1, 1]} : vector<2x128xf32> to vector<2x32xf32>
    %24 = vector.extract_strided_slice %21 {offsets = [0, 64], sizes = [2, 32], strides = [1, 1]} : vector<2x128xf32> to vector<2x32xf32>
    %25 = vector.extract_strided_slice %20 {offsets = [0, 96], sizes = [2, 32], strides = [1, 1]} : vector<2x128xf32> to vector<2x32xf32>
    %26 = arith.mulf %23, %11 : vector<2x32xf32>
    %27 = arith.mulf %22, %24 : vector<2x32xf32>
    %28 = arith.addf %26, %27 : vector<2x32xf32>
    %29 = math.tanh %28 : vector<2x32xf32>
    %30 = arith.mulf %25, %29 : vector<2x32xf32>
    %31 = vector.extract_strided_slice %7 {offsets = [2, 0], sizes = [2, 128], strides = [1, 1]} : vector<16x128xf32> to vector<2x128xf32>
    %32 = arith.truncf %30 : vector<2x32xf32> to vector<2x32xbf16>
    %cst_11 = arith.constant dense<0.000000e+00> : vector<2x128xf32>
    %33 = tpu.matmul %32, %9, %cst_11 {dimension_numbers = #tpu.dot_dimension_numbers<[1], [0], [0], [1], [0, 0, 1, 1], [], []>} : vector<2x32xbf16>, vector<32x128xbf16>, vector<2x128xf32> -> vector<2x128xf32>
    %34 = arith.addf %31, %33 : vector<2x128xf32>
    %35 = arith.negf %34 : vector<2x128xf32>
    %36 = math.exp %35 : vector<2x128xf32>
    %cst_12 = arith.constant 1.000000e+00 : f32
    %37 = vector.broadcast %cst_12 : f32 to vector<2x128xf32>
    %38 = arith.addf %37, %36 : vector<2x128xf32>
    %39 = arith.divf %37, %38 : vector<2x128xf32>
    %40 = math.tanh %34 : vector<2x128xf32>
    %41 = vector.extract_strided_slice %39 {offsets = [0, 0], sizes = [2, 32], strides = [1, 1]} : vector<2x128xf32> to vector<2x32xf32>
    %42 = vector.extract_strided_slice %39 {offsets = [0, 32], sizes = [2, 32], strides = [1, 1]} : vector<2x128xf32> to vector<2x32xf32>
    %43 = vector.extract_strided_slice %40 {offsets = [0, 64], sizes = [2, 32], strides = [1, 1]} : vector<2x128xf32> to vector<2x32xf32>
    %44 = vector.extract_strided_slice %39 {offsets = [0, 96], sizes = [2, 32], strides = [1, 1]} : vector<2x128xf32> to vector<2x32xf32>
    %45 = arith.mulf %42, %28 : vector<2x32xf32>
    %46 = arith.mulf %41, %43 : vector<2x32xf32>
    %47 = arith.addf %45, %46 : vector<2x32xf32>
    %48 = math.tanh %47 : vector<2x32xf32>
    %49 = arith.mulf %44, %48 : vector<2x32xf32>
    %50 = vector.extract_strided_slice %7 {offsets = [4, 0], sizes = [2, 128], strides = [1, 1]} : vector<16x128xf32> to vector<2x128xf32>
    %51 = arith.truncf %49 : vector<2x32xf32> to vector<2x32xbf16>
    %cst_13 = arith.constant dense<0.000000e+00> : vector<2x128xf32>
    %52 = tpu.matmul %51, %9, %cst_13 {dimension_numbers = #tpu.dot_dimension_numbers<[1], [0], [0], [1], [0, 0, 1, 1], [], []>} : vector<2x32xbf16>, vector<32x128xbf16>, vector<2x128xf32> -> vector<2x128xf32>
    %53 = arith.addf %50, %52 : vector<2x128xf32>
    %54 = arith.negf %53 : vector<2x128xf32>
    %55 = math.exp %54 : vector<2x128xf32>
    %cst_14 = arith.constant 1.000000e+00 : f32
    %56 = vector.broadcast %cst_14 : f32 to vector<2x128xf32>
    %57 = arith.addf %56, %55 : vector<2x128xf32>
    %58 = arith.divf %56, %57 : vector<2x128xf32>
    %59 = math.tanh %53 : vector<2x128xf32>
    %60 = vector.extract_strided_slice %58 {offsets = [0, 0], sizes = [2, 32], strides = [1, 1]} : vector<2x128xf32> to vector<2x32xf32>
    %61 = vector.extract_strided_slice %58 {offsets = [0, 32], sizes = [2, 32], strides = [1, 1]} : vector<2x128xf32> to vector<2x32xf32>
    %62 = vector.extract_strided_slice %59 {offsets = [0, 64], sizes = [2, 32], strides = [1, 1]} : vector<2x128xf32> to vector<2x32xf32>
    %63 = vector.extract_strided_slice %58 {offsets = [0, 96], sizes = [2, 32], strides = [1, 1]} : vector<2x128xf32> to vector<2x32xf32>
    %64 = arith.mulf %61, %47 : vector<2x32xf32>
    %65 = arith.mulf %60, %62 : vector<2x32xf32>
    %66 = arith.addf %64, %65 : vector<2x32xf32>
    %67 = math.tanh %66 : vector<2x32xf32>
    %68 = arith.mulf %63, %67 : vector<2x32xf32>
    %69 = vector.extract_strided_slice %7 {offsets = [6, 0], sizes = [2, 128], strides = [1, 1]} : vector<16x128xf32> to vector<2x128xf32>
    %70 = arith.truncf %68 : vector<2x32xf32> to vector<2x32xbf16>
    %cst_15 = arith.constant dense<0.000000e+00> : vector<2x128xf32>
    %71 = tpu.matmul %70, %9, %cst_15 {dimension_numbers = #tpu.dot_dimension_numbers<[1], [0], [0], [1], [0, 0, 1, 1], [], []>} : vector<2x32xbf16>, vector<32x128xbf16>, vector<2x128xf32> -> vector<2x128xf32>
    %72 = arith.addf %69, %71 : vector<2x128xf32>
    %73 = arith.negf %72 : vector<2x128xf32>
    %74 = math.exp %73 : vector<2x128xf32>
    %cst_16 = arith.constant 1.000000e+00 : f32
    %75 = vector.broadcast %cst_16 : f32 to vector<2x128xf32>
    %76 = arith.addf %75, %74 : vector<2x128xf32>
    %77 = arith.divf %75, %76 : vector<2x128xf32>
    %78 = math.tanh %72 : vector<2x128xf32>
    %79 = vector.extract_strided_slice %77 {offsets = [0, 0], sizes = [2, 32], strides = [1, 1]} : vector<2x128xf32> to vector<2x32xf32>
    %80 = vector.extract_strided_slice %77 {offsets = [0, 32], sizes = [2, 32], strides = [1, 1]} : vector<2x128xf32> to vector<2x32xf32>
    %81 = vector.extract_strided_slice %78 {offsets = [0, 64], sizes = [2, 32], strides = [1, 1]} : vector<2x128xf32> to vector<2x32xf32>
    %82 = vector.extract_strided_slice %77 {offsets = [0, 96], sizes = [2, 32], strides = [1, 1]} : vector<2x128xf32> to vector<2x32xf32>
    %83 = arith.mulf %80, %66 : vector<2x32xf32>
    %84 = arith.mulf %79, %81 : vector<2x32xf32>
    %85 = arith.addf %83, %84 : vector<2x32xf32>
    %86 = math.tanh %85 : vector<2x32xf32>
    %87 = arith.mulf %82, %86 : vector<2x32xf32>
    %88 = vector.extract_strided_slice %7 {offsets = [8, 0], sizes = [2, 128], strides = [1, 1]} : vector<16x128xf32> to vector<2x128xf32>
    %89 = arith.truncf %87 : vector<2x32xf32> to vector<2x32xbf16>
    %cst_17 = arith.constant dense<0.000000e+00> : vector<2x128xf32>
    %90 = tpu.matmul %89, %9, %cst_17 {dimension_numbers = #tpu.dot_dimension_numbers<[1], [0], [0], [1], [0, 0, 1, 1], [], []>} : vector<2x32xbf16>, vector<32x128xbf16>, vector<2x128xf32> -> vector<2x128xf32>
    %91 = arith.addf %88, %90 : vector<2x128xf32>
    %92 = arith.negf %91 : vector<2x128xf32>
    %93 = math.exp %92 : vector<2x128xf32>
    %cst_18 = arith.constant 1.000000e+00 : f32
    %94 = vector.broadcast %cst_18 : f32 to vector<2x128xf32>
    %95 = arith.addf %94, %93 : vector<2x128xf32>
    %96 = arith.divf %94, %95 : vector<2x128xf32>
    %97 = math.tanh %91 : vector<2x128xf32>
    %98 = vector.extract_strided_slice %96 {offsets = [0, 0], sizes = [2, 32], strides = [1, 1]} : vector<2x128xf32> to vector<2x32xf32>
    %99 = vector.extract_strided_slice %96 {offsets = [0, 32], sizes = [2, 32], strides = [1, 1]} : vector<2x128xf32> to vector<2x32xf32>
    %100 = vector.extract_strided_slice %97 {offsets = [0, 64], sizes = [2, 32], strides = [1, 1]} : vector<2x128xf32> to vector<2x32xf32>
    %101 = vector.extract_strided_slice %96 {offsets = [0, 96], sizes = [2, 32], strides = [1, 1]} : vector<2x128xf32> to vector<2x32xf32>
    %102 = arith.mulf %99, %85 : vector<2x32xf32>
    %103 = arith.mulf %98, %100 : vector<2x32xf32>
    %104 = arith.addf %102, %103 : vector<2x32xf32>
    %105 = math.tanh %104 : vector<2x32xf32>
    %106 = arith.mulf %101, %105 : vector<2x32xf32>
    %107 = vector.extract_strided_slice %7 {offsets = [10, 0], sizes = [2, 128], strides = [1, 1]} : vector<16x128xf32> to vector<2x128xf32>
    %108 = arith.truncf %106 : vector<2x32xf32> to vector<2x32xbf16>
    %cst_19 = arith.constant dense<0.000000e+00> : vector<2x128xf32>
    %109 = tpu.matmul %108, %9, %cst_19 {dimension_numbers = #tpu.dot_dimension_numbers<[1], [0], [0], [1], [0, 0, 1, 1], [], []>} : vector<2x32xbf16>, vector<32x128xbf16>, vector<2x128xf32> -> vector<2x128xf32>
    %110 = arith.addf %107, %109 : vector<2x128xf32>
    %111 = arith.negf %110 : vector<2x128xf32>
    %112 = math.exp %111 : vector<2x128xf32>
    %cst_20 = arith.constant 1.000000e+00 : f32
    %113 = vector.broadcast %cst_20 : f32 to vector<2x128xf32>
    %114 = arith.addf %113, %112 : vector<2x128xf32>
    %115 = arith.divf %113, %114 : vector<2x128xf32>
    %116 = math.tanh %110 : vector<2x128xf32>
    %117 = vector.extract_strided_slice %115 {offsets = [0, 0], sizes = [2, 32], strides = [1, 1]} : vector<2x128xf32> to vector<2x32xf32>
    %118 = vector.extract_strided_slice %115 {offsets = [0, 32], sizes = [2, 32], strides = [1, 1]} : vector<2x128xf32> to vector<2x32xf32>
    %119 = vector.extract_strided_slice %116 {offsets = [0, 64], sizes = [2, 32], strides = [1, 1]} : vector<2x128xf32> to vector<2x32xf32>
    %120 = vector.extract_strided_slice %115 {offsets = [0, 96], sizes = [2, 32], strides = [1, 1]} : vector<2x128xf32> to vector<2x32xf32>
    %121 = arith.mulf %118, %104 : vector<2x32xf32>
    %122 = arith.mulf %117, %119 : vector<2x32xf32>
    %123 = arith.addf %121, %122 : vector<2x32xf32>
    %124 = math.tanh %123 : vector<2x32xf32>
    %125 = arith.mulf %120, %124 : vector<2x32xf32>
    %126 = vector.extract_strided_slice %7 {offsets = [12, 0], sizes = [2, 128], strides = [1, 1]} : vector<16x128xf32> to vector<2x128xf32>
    %127 = arith.truncf %125 : vector<2x32xf32> to vector<2x32xbf16>
    %cst_21 = arith.constant dense<0.000000e+00> : vector<2x128xf32>
    %128 = tpu.matmul %127, %9, %cst_21 {dimension_numbers = #tpu.dot_dimension_numbers<[1], [0], [0], [1], [0, 0, 1, 1], [], []>} : vector<2x32xbf16>, vector<32x128xbf16>, vector<2x128xf32> -> vector<2x128xf32>
    %129 = arith.addf %126, %128 : vector<2x128xf32>
    %130 = arith.negf %129 : vector<2x128xf32>
    %131 = math.exp %130 : vector<2x128xf32>
    %cst_22 = arith.constant 1.000000e+00 : f32
    %132 = vector.broadcast %cst_22 : f32 to vector<2x128xf32>
    %133 = arith.addf %132, %131 : vector<2x128xf32>
    %134 = arith.divf %132, %133 : vector<2x128xf32>
    %135 = math.tanh %129 : vector<2x128xf32>
    %136 = vector.extract_strided_slice %134 {offsets = [0, 0], sizes = [2, 32], strides = [1, 1]} : vector<2x128xf32> to vector<2x32xf32>
    %137 = vector.extract_strided_slice %134 {offsets = [0, 32], sizes = [2, 32], strides = [1, 1]} : vector<2x128xf32> to vector<2x32xf32>
    %138 = vector.extract_strided_slice %135 {offsets = [0, 64], sizes = [2, 32], strides = [1, 1]} : vector<2x128xf32> to vector<2x32xf32>
    %139 = vector.extract_strided_slice %134 {offsets = [0, 96], sizes = [2, 32], strides = [1, 1]} : vector<2x128xf32> to vector<2x32xf32>
    %140 = arith.mulf %137, %123 : vector<2x32xf32>
    %141 = arith.mulf %136, %138 : vector<2x32xf32>
    %142 = arith.addf %140, %141 : vector<2x32xf32>
    %143 = math.tanh %142 : vector<2x32xf32>
    %144 = arith.mulf %139, %143 : vector<2x32xf32>
    %145 = vector.extract_strided_slice %7 {offsets = [14, 0], sizes = [2, 128], strides = [1, 1]} : vector<16x128xf32> to vector<2x128xf32>
    %146 = arith.truncf %144 : vector<2x32xf32> to vector<2x32xbf16>
    %cst_23 = arith.constant dense<0.000000e+00> : vector<2x128xf32>
    %147 = tpu.matmul %146, %9, %cst_23 {dimension_numbers = #tpu.dot_dimension_numbers<[1], [0], [0], [1], [0, 0, 1, 1], [], []>} : vector<2x32xbf16>, vector<32x128xbf16>, vector<2x128xf32> -> vector<2x128xf32>
    %148 = arith.addf %145, %147 : vector<2x128xf32>
    %149 = arith.negf %148 : vector<2x128xf32>
    %150 = math.exp %149 : vector<2x128xf32>
    %cst_24 = arith.constant 1.000000e+00 : f32
    %151 = vector.broadcast %cst_24 : f32 to vector<2x128xf32>
    %152 = arith.addf %151, %150 : vector<2x128xf32>
    %153 = arith.divf %151, %152 : vector<2x128xf32>
    %154 = math.tanh %148 : vector<2x128xf32>
    %155 = vector.extract_strided_slice %153 {offsets = [0, 0], sizes = [2, 32], strides = [1, 1]} : vector<2x128xf32> to vector<2x32xf32>
    %156 = vector.extract_strided_slice %153 {offsets = [0, 32], sizes = [2, 32], strides = [1, 1]} : vector<2x128xf32> to vector<2x32xf32>
    %157 = vector.extract_strided_slice %154 {offsets = [0, 64], sizes = [2, 32], strides = [1, 1]} : vector<2x128xf32> to vector<2x32xf32>
    %158 = vector.extract_strided_slice %153 {offsets = [0, 96], sizes = [2, 32], strides = [1, 1]} : vector<2x128xf32> to vector<2x32xf32>
    %159 = arith.mulf %156, %142 : vector<2x32xf32>
    %160 = arith.mulf %155, %157 : vector<2x32xf32>
    %161 = arith.addf %159, %160 : vector<2x32xf32>
    %162 = math.tanh %161 : vector<2x32xf32>
    %163 = arith.mulf %158, %162 : vector<2x32xf32>
    %164 = arith.truncf %163 : vector<2x32xf32> to vector<2x32xbf16>
    %c0_25 = arith.constant 0 : index
    %c0_26 = arith.constant 0 : index
    %165 = vector.load %arg4[%c0_25, %c0_26] : memref<32x32xf32, #tpu.memory_space<vmem>>, vector<32x32xf32>
    %166 = arith.truncf %165 : vector<32x32xf32> to vector<32x32xbf16>
    %cst_27 = arith.constant dense<0.000000e+00> : vector<2x32xf32>
    %167 = tpu.matmul %164, %166, %cst_27 {dimension_numbers = #tpu.dot_dimension_numbers<[1], [0], [0], [1], [0, 0, 1, 1], [], []>} : vector<2x32xbf16>, vector<32x32xbf16>, vector<2x32xf32> -> vector<2x32xf32>
    %c0_28 = arith.constant 0 : index
    %c0_29 = arith.constant 0 : index
    %168 = vector.load %arg5[%c0_28, %c0_29] : memref<1x32xf32, #tpu.memory_space<vmem>>, vector<1x32xf32>
    %169 = vector.broadcast %168 : vector<1x32xf32> to vector<2x32xf32>
    %170 = arith.addf %167, %169 : vector<2x32xf32>
    %cst_30 = arith.constant 0.000000e+00 : f32
    %171 = vector.broadcast %cst_30 : f32 to vector<2x32xf32>
    %172 = arith.maximumf %170, %171 : vector<2x32xf32>
    %173 = arith.truncf %172 : vector<2x32xf32> to vector<2x32xbf16>
    %c0_31 = arith.constant 0 : index
    %c0_32 = arith.constant 0 : index
    %174 = vector.load %arg6[%c0_31, %c0_32] : memref<32x8xf32, #tpu.memory_space<vmem>>, vector<32x8xf32>
    %175 = arith.truncf %174 : vector<32x8xf32> to vector<32x8xbf16>
    %cst_33 = arith.constant dense<0.000000e+00> : vector<2x8xf32>
    %176 = tpu.matmul %173, %175, %cst_33 {dimension_numbers = #tpu.dot_dimension_numbers<[1], [0], [0], [1], [0, 0, 1, 1], [], []>} : vector<2x32xbf16>, vector<32x8xbf16>, vector<2x8xf32> -> vector<2x8xf32>
    %c0_34 = arith.constant 0 : index
    %c0_35 = arith.constant 0 : index
    %177 = vector.load %arg7[%c0_34, %c0_35] : memref<1x8xf32, #tpu.memory_space<vmem>>, vector<1x8xf32>
    %178 = vector.broadcast %177 : vector<1x8xf32> to vector<2x8xf32>
    %179 = arith.addf %176, %178 : vector<2x8xf32>
    %180 = vector.extract_strided_slice %179 {offsets = [0, 0], sizes = [2, 4], strides = [1, 1]} : vector<2x8xf32> to vector<2x4xf32>
    %181 = math.tanh %180 : vector<2x4xf32>
    %182 = vector.extract_strided_slice %179 {offsets = [0, 4], sizes = [2, 4], strides = [1, 1]} : vector<2x8xf32> to vector<2x4xf32>
    %cst_36 = arith.constant 0.000000e+00 : f32
    %183 = vector.broadcast %cst_36 : f32 to vector<2x4xf32>
    %184 = arith.maximumf %182, %183 : vector<2x4xf32>
    %185 = vector.broadcast %cst_36 : f32 to vector<2x4xf32>
    %186 = arith.subf %182, %185 : vector<2x4xf32>
    %187 = arith.cmpf one, %186, %186 : vector<2x4xf32>
    %188 = vector.broadcast %cst_36 : f32 to vector<2x4xf32>
    %189 = arith.addf %182, %188 : vector<2x4xf32>
    %190 = math.absf %186 : vector<2x4xf32>
    %cst_37 = arith.constant 0.000000e+00 : f32
    %191 = vector.broadcast %cst_37 : f32 to vector<2x4xf32>
    %192 = arith.subf %191, %190 : vector<2x4xf32>
    %193 = math.exp %192 : vector<2x4xf32>
    %194 = math.log1p %193 : vector<2x4xf32>
    %195 = arith.addf %184, %194 : vector<2x4xf32>
    %196 = arith.select %187, %189, %195 : vector<2x4xi1>, vector<2x4xf32>
    %cst_38 = arith.constant 9.99999974E-6 : f32
    %197 = vector.broadcast %cst_38 : f32 to vector<2x4xf32>
    %198 = arith.addf %196, %197 : vector<2x4xf32>
    %c0_39 = arith.constant 0 : index
    %c0_40 = arith.constant 0 : index
    %199 = vector.load %arg8[%c0_39, %c0_40] : memref<2x4xf32, #tpu.memory_space<vmem>>, vector<2x4xf32>
    %200 = arith.mulf %198, %199 : vector<2x4xf32>
    %201 = arith.addf %181, %200 : vector<2x4xf32>
    %cst_41 = arith.constant -5.000000e-01 : f32
    %202 = vector.broadcast %cst_41 : f32 to vector<2x4xf32>
    %203 = arith.mulf %202, %199 : vector<2x4xf32>
    %204 = arith.mulf %203, %199 : vector<2x4xf32>
    %205 = math.log %198 : vector<2x4xf32>
    %206 = arith.subf %204, %205 : vector<2x4xf32>
    %cst_42 = arith.constant 0.918938517 : f32
    %207 = vector.broadcast %cst_42 : f32 to vector<2x4xf32>
    %208 = arith.subf %206, %207 : vector<2x4xf32>
    %cst_43 = arith.constant dense<0.000000e+00> : vector<2xf32>
    %209 = vector.multi_reduction <add>, %208, %cst_43 [1] : vector<2x4xf32> to vector<2xf32>
    %210 = vector.shape_cast %209 : vector<2xf32> to vector<2x1xf32>
    %211 = vector.shape_cast %210 : vector<2x1xf32> to vector<2x1xf32>
    %212 = vector.broadcast %211 : vector<2x1xf32> to vector<2x4xf32>
    %cst_44 = arith.constant 0.000000e+00 : f32
    %213 = vector.broadcast %cst_44 : f32 to vector<2x112xf32>
    %214 = tpu.concatenate %181, %198, %201, %212, %213 in 1 : vector<2x4xf32>, vector<2x4xf32>, vector<2x4xf32>, vector<2x4xf32>, vector<2x112xf32> -> vector<2x128xf32>
    %cst_45 = arith.constant 0.000000e+00 : f32
    %215 = vector.broadcast %cst_45 : f32 to vector<6x128xf32>
    %216 = tpu.concatenate %214, %215 in 0 : vector<2x128xf32>, vector<6x128xf32> -> vector<8x128xf32>
    %c0_46 = arith.constant 0 : index
    %c0_47 = arith.constant 0 : index
    %217 = vector.load %arg9[%c0_46, %c0_47] : memref<8x128xf32, #tpu.memory_space<vmem>>, vector<8x128xf32>
    tpu.vector_store %arg9[%c0_46, %c0_47], %216 {strides = array<i32>} : memref<8x128xf32, #tpu.memory_space<vmem>>, vector<8x128xf32>,
    return
  }
}

</mosaic_0001>

<bundles_post_ra>
// kernel: actor_network_forward.1
= control target key start
LH: loop header
LB: loop body
LE: loop exit
PB: predicated region body
PF: predicated region fallthrough
CT: control target
= control target key end

     0   :  { %14 = vsyncpa [#allocation3], 0  ;;  %s1462_s0 = inlined_call_operand.vmem [shape: f32[16,8], index: 0, kind: input, shape index: {}]   ;;  %s1463_s1 = inlined_call_operand.vmem [shape: f32[8,128], index: 1, kind: input, shape index: {}]   ;;  %s1464_s2 = inlined_call_operand.vmem [shape: f32[32,128], index: 2, kind: input, shape index: {}]   ;;  %s1465_s3 = inlined_call_operand.hbm [shape: f32[1,128], index: 3, kind: input, shape index: {}]   ;;  %s1466_s4 = inlined_call_operand.vmem [shape: f32[32,32], index: 4, kind: input, shape index: {}]   ;;  %s1467_s5 = inlined_call_operand.hbm [shape: f32[1,32], index: 5, kind: input, shape index: {}]   ;;  %s1468_s6 = inlined_call_operand.vmem [shape: f32[32,8], index: 6, kind: input, shape index: {}]   ;;  %s1469_s7 = inlined_call_operand.hbm [shape: f32[1,8], index: 7, kind: input, shape index: {}]   ;;  %s1470_s8 = inlined_call_operand.vmem [shape: f32[2,4], index: 8, kind: input, shape index: {}]   ;;  %s1471_s9 = inlined_call_operand.vmem [shape: f32[8,128], index: 9, kind: output, shape index: {}]  }
   0x1   :  { %15 = vsyncpa [#allocation5], 0  ;;  %s1223_s30 = smov [#allocation4]   ;;  %s1224_s11 = smov [#allocation2]  }
   0x2   :  { %s40_s10 = sshll.u32 %s1223_s30, 4  ;;  %s28_s12 = sshll.u32 %s1224_s11, 4  ;;  %s41_s10 = int_to_ptr.vmem [resolvable:$true] %s40_s10  ;;  %s29_s12 = int_to_ptr.vmem [resolvable:$true] %s28_s12 }
   0x3   :  { %s1167_s13 = scalar_lea.vmem %s41_s10, 16  ;;  %s1171_s14 = scalar_lea.vmem %s41_s10, 32 }
   0x4   :  { %p1168_p0 = scmp.ne.s32.totalorder %s41_s10, %s1167_s13  ;;  %p1172_p1 = scmp.lt.s32.totalorder %s41_s10, %s41_s10 }
   0x5   :  { %p1173_p2 = scmp.lt.s32.totalorder %s1171_s14, %s1167_s13 }
   0x7   :  { %p1174_p3 = por %p1173_p2, %p1172_p1 }
   0x9   :  { %p1175_p4 = pnand %p1174_p3, %p1168_p0 }
   0xb   :  { %1178 = shalt.err (!%p1175_p4)
}
   0xc   :  { %43 = dma.hbm_to_vmem [thread:$0]  %s1467_s5, 16, %s41_s10, [#allocation5]  }
   0xd   :  { %s1187_s17 = scalar_lea.vmem %s29_s12, 16  ;;  %s1191_s18 = scalar_lea.vmem %s29_s12, 32 }
   0xe   :  { %p1188_p5 = scmp.ne.s32.totalorder %s29_s12, %s1187_s17  ;;  %p1192_p6 = scmp.lt.s32.totalorder %s29_s12, %s29_s12 }
   0xf   :  { %p1193_p7 = scmp.lt.s32.totalorder %s1191_s18, %s1187_s17 }
  0x11   :  { %p1194_p8 = por %p1193_p7, %p1192_p6 }
  0x13   :  { %p1195_p9 = pnand %p1194_p8, %p1188_p5 }
  0x15   :  { %1198 = shalt.err (!%p1195_p9)
}
  0x16   :  { %31 = dma.hbm_to_vmem [thread:$0]  %s1465_s3, 16, %s29_s12, [#allocation3]  }
  0x17   :  { %s1225_s21 = smov [#allocation6]  }
  0x18   :  { %s52_s22 = sshll.u32 %s1225_s21, 4  ;;  %s53_s22 = int_to_ptr.vmem [resolvable:$true] %s52_s22 }
  0x19   :  { %s1207_s23 = scalar_lea.vmem %s53_s22, 16  ;;  %s1211_s24 = scalar_lea.vmem %s53_s22, 32 }
  0x1a   :  { %p1208_p10 = scmp.ne.s32.totalorder %s53_s22, %s1207_s23  ;;  %p1212_p11 = scmp.lt.s32.totalorder %s53_s22, %s53_s22 }
  0x1b   :  { %p1213_p12 = scmp.lt.s32.totalorder %s1211_s24, %s1207_s23 }
  0x1d   :  { %p1214_p13 = por %p1213_p12, %p1212_p11 }
  0x1f   :  { %p1215_p0 = pnand %p1214_p13, %p1208_p10 }
  0x21   :  { %1218 = shalt.err (!%p1215_p0)
}
  0x22   :  { %55 = dma.hbm_to_vmem [thread:$0]  %s1469_s7, 16, %s53_s22, [#allocation5]  }
  0x23   :  { %1219 = dma.done.wait [#allocation3], 16  }
  0x24   :  { %1220 = vsyncadd [#allocation3], 4294967280 }
  0x25   :  { %1221 = dma.done.wait [#allocation5], 32  }
  0x26   :  { %1222 = vsyncadd [#allocation5], 4294967264  ;;  %v1226_v0 = vmov 0.0   ;;  %vm1227_vm0 = vmmov 0   ;;  %v131_v1 = vld [vmem:[%s1464_s2 + $0x10] sm:$0xff]  ;;  %v132_v2 = vld [vmem:[%s1464_s2 + $0x18] sm:$0xff] }
  0x27   :  { %996 = vmatprep.subr.bf16.mxu1 %v1226_v0  ;;  %990 = vmatprep.subr.bf16.mxu0 %v1226_v0  ;;  %v71_v3 = vld [vmem:[%s1463_s1] sm:$0xff]  ;;  %vm84_vm1 = vcmask 1043456   ;;  %v1308_v4 = vpack.c.bf16 %v132_v2, %v131_v1  ;;  %v69_v7 = vld [vmem:[%s1462_s0 + $0x8] sm:$0xff]  ;;  %vm80_vm2 = vcmask 64512   ;;  %v1228_v13 = vmov 0   ;;  %s1230_s1 = smov 32  }
  0x28   :  { %992 = vmatprep.mubr.msk.bf16.mxu0 %vm1227_vm0, %v1226_v0  ;;  %1000 = vmatprep.mubr.msk.bf16.mxu1 %vm1227_vm0, %v1226_v0  ;;  %v72_v5 = vpack.c.bf16 %v71_v3, %v71_v3  ;;  %v68_v6 = vld [vmem:[%s1462_s0] sm:$0xff]  ;;  %v130_v9 = vld [vmem:[%s1464_s2 + $0x8] sm:$0xff]  ;;  %s1229_s0 = smov 64   ;;  %vm135_vm3 = vcmask 261120   ;;  %s1231_s30 = smov 4   ;;  %vm912_vm6 = vcmask 25600  }
  0x29   :  { %v129_v8 = vld [vmem:[%s1464_s2] sm:$0xff]  ;;  %997 = vmatpush3.bf16.msra.mxu1 %v1308_v4  ;;  %v70_v11 = vpack.c.bf16 %v69_v7, %v68_v6  ;;  %vm920_vm7 = vcmask 31744   ;;  %vm923_vm8 = vcmask 97280   ;;  %vm925_vm9 = vcmask 130048  }
  0x2a   :  { %v86_v10 = vsel %vm84_vm1, %v72_v5, 0  ;;  %v1323_v12 = vpack.c.bf16 %v130_v9, %v129_v8  ;;  %998 = vmatprep.subr.bf16.mxu1 %v1226_v0  ;;  %v936_v14 = vld [vmem:[#allocation2] ss:$0 sm:$0xff]  ;;  %vm927_vm10 = vcmask 1041408  }
  0x2b   :  { %991 = vmatpush3.bf16.msra.mxu0 %v86_v10 }
  0x2c   :  { %1004 = vmatprep.subr.bf16.mxu0 %v1226_v0 }
  0x2d   :  { %999 = vmatpush3.bf16.msra.mxu1 %v1323_v12 }
  0x2e   :  { %993 = vmatmul.mubr.msk.bf16.vlgmr.msra.gmra.mxu0 %vm80_vm2, %v70_v11  ;;  %1012 = vmatprep.subr.bf16.mxu1 %v1226_v0 }
  0x2f   :  { %1005 = vmatpush3.bf16.msra.mxu0 %v1308_v4  ;;  %1008 = vmatprep.mubr.msk.bf16.mxu0 %vm1227_vm0, %v1226_v0 }
  0x30   :  { %1006 = vmatprep.subr.bf16.mxu0 %v1226_v0  ;;  %1001 = vmatmul.mubr.bf16.vlgmr.msra.gmra.mxu1 %v1228_v13 }
  0x31   :  { %1013 = vmatpush3.bf16.msra.mxu1 %v1308_v4  ;;  %1016 = vmatprep.mubr.msk.bf16.mxu1 %vm1227_vm0, %v1226_v0 }
  0x32   :  { %1014 = vmatprep.subr.bf16.mxu1 %v1226_v0 }
  0x33   :  { %1007 = vmatpush3.bf16.msra.mxu0 %v1323_v12 }
  0x34   :  { %1020 = vmatprep.subr.bf16.mxu0 %v1226_v0 }
  0x35   :  { %1015 = vmatpush3.bf16.msra.mxu1 %v1323_v12 }
  0x36   :  { %1028 = vmatprep.subr.bf16.mxu1 %v1226_v0 }
  0xee   :  { %v122_v15 = vpop.f32.mrf.mxu0 }
  0xef   :  { %v1342_v16 = vadd.f32 %v936_v14, %v122_v15 }
  0xf0   :  { %v994_v17 = vpop.f32.mrf.mxu0  ;;  %v173_v18 = vpop.f32.mrf.mxu1 }
  0xf1   :  { %v179_v19 = vadd.f32 %v173_v18, %v1342_v16 }
  0xf2   :  { %v125_v20 = vpop.f32.mrf.mxu0  ;;  %v1002_v22 = vpop.f32.mrf.mxu1 }
  0xf3   :  { %v1345_v21 = vadd.f32 %v936_v14, %v125_v20  ;;  %1087 = vtanh.f32 %v179_v19  ;;  %v938_v27 = vmul.f32 -1.442695, %v179_v19 }
  0xf4   :  { %v995_v23 = vpop.f32.mrf.mxu0  ;;  %v176_v24 = vpop.f32.mrf.mxu1 }
  0xf5   :  { %1089 = vpow2.f32 %v938_v27 }
  0xf6   :  { %v1003_v25 = vpop.f32.mrf.mxu1 }
 0x100   :  { %v1088_v26 = vpop.eup %1087 }
 0x101   :  { %189 = vrot.lane.b32.xlu0 %v1088_v26, %s1229_s0 }
 0x102   :  { %v1090_v28 = vpop.eup %1089 }
 0x103   :  { %v183_v29 = vadd.f32 1.0, %v1090_v28 }
 0x105   :  { %1091 = vrcp.f32 %v183_v29 }
 0x112   :  { %v1092_v30 = vpop.eup %1091 }
 0x113   :  { %v187_v33 = vmul.f32 0.0, %v1092_v30 }
 0x173   :  { %v190_v31 = vpop.permute.xlu0 %189 }
 0x174   :  { %v192_v32 = vmul.f32 %v1092_v30, %v190_v31 }
 0x176   :  { %194 = vrot.lane.b32.xlu0 %v192_v32, %s1230_s1 }
 0x1e8   :  { %v195_v34 = vpop.permute.xlu0 %194 }
 0x1e9   :  { %v197_v35 = vadd.f32 %v195_v34, %v187_v33 }
 0x1eb   :  { %1093 = vtanh.f32 %v197_v35  ;;  %v263_v54 = vrot.slane %v197_v35, 6 }
 0x1f8   :  { %v1094_v36 = vpop.eup %1093 }
 0x1f9   :  { %200 = vrot.lane.b32.xlu1 %v1094_v36, %s1229_s0 }
 0x26b   :  { %v201_v37 = vpop.permute.xlu1 %200 }
 0x26c   :  { %v203_v38 = vmul.f32 %v1092_v30, %v201_v37 }
 0x26e   :  { %v204_v39 = vpack.c.bf16 %v203_v38, %v203_v38 }
 0x270   :  { %206 = vrot.lane.b32.xlu1 %v204_v39, %s1230_s1 }
 0x2e2   :  { %v207_v40 = vpop.permute.xlu1 %206 }
 0x2e3   :  { %1009 = vmatmul.mubr.msk.bf16.vlgmr.msra.gmra.mxu0 %vm135_vm3, %v207_v40 }
 0x2e4   :  { %1021 = vmatpush3.bf16.msra.mxu0 %v1308_v4  ;;  %1024 = vmatprep.mubr.msk.bf16.mxu0 %vm1227_vm0, %v1226_v0 }
 0x2e5   :  { %1022 = vmatprep.subr.bf16.mxu0 %v1226_v0 }
 0x2e8   :  { %1023 = vmatpush3.bf16.msra.mxu0 %v1323_v12 }
 0x2e9   :  { %1036 = vmatprep.subr.bf16.mxu0 %v1226_v0 }
 0x3a3   :  { %v245_v41 = vpop.f32.mrf.mxu0 }
 0x3a4   :  { %v252_v42 = vrot.slane %v245_v41, 6 }
 0x3a5   :  { %v1010_v43 = vpop.f32.mrf.mxu0 }
 0x3a6   :  { %v254_v44 = vadd.f32 %v252_v42, %v1342_v16 }
 0x3a7   :  { %v248_v45 = vpop.f32.mrf.mxu0 }
 0x3a8   :  { %1095 = vtanh.f32 %v254_v44  ;;  %v940_v48 = vmul.f32 -1.442695, %v254_v44 }
 0x3a9   :  { %v1011_v46 = vpop.f32.mrf.mxu0 }
 0x3aa   :  { %1097 = vpow2.f32 %v940_v48 }
 0x3b5   :  { %v1096_v47 = vpop.eup %1095 }
 0x3b6   :  { %267 = vrot.lane.b32.xlu0 %v1096_v47, %s1229_s0 }
 0x3b7   :  { %v1098_v49 = vpop.eup %1097 }
 0x3b8   :  { %v258_v50 = vadd.f32 1.0, %v1098_v49 }
 0x3ba   :  { %1099 = vrcp.f32 %v258_v50 }
 0x3c7   :  { %v1100_v51 = vpop.eup %1099 }
 0x3c8   :  { %v265_v55 = vmul.f32 %v1100_v51, %v263_v54 }
 0x428   :  { %v268_v52 = vpop.permute.xlu0 %267 }
 0x429   :  { %v270_v53 = vmul.f32 %v1100_v51, %v268_v52 }
 0x42b   :  { %272 = vrot.lane.b32.xlu1 %v270_v53, %s1230_s1 }
 0x49d   :  { %v273_v56 = vpop.permute.xlu1 %272 }
 0x49e   :  { %v275_v57 = vadd.f32 %v273_v56, %v265_v55 }
 0x4a0   :  { %1101 = vtanh.f32 %v275_v57  ;;  %v342_v17 = vrot.slane %v275_v57, 6 }
 0x4ad   :  { %v1102_v58 = vpop.eup %1101 }
 0x4ae   :  { %278 = vrot.lane.b32.xlu0 %v1102_v58, %s1229_s0 }
 0x520   :  { %v279_v59 = vpop.permute.xlu0 %278 }
 0x521   :  { %v281_v60 = vmul.f32 %v1100_v51, %v279_v59 }
 0x523   :  { %v282_v61 = vpack.c.bf16 %v281_v60, %v281_v60 }
 0x525   :  { %v284_v62 = vrot.slane %v282_v61, 1 }
 0x527   :  { %285 = vrot.lane.b32.xlu1 %v284_v62, %s1230_s1 }
 0x599   :  { %v286_v63 = vpop.permute.xlu1 %285 }
 0x59a   :  { %1017 = vmatmul.mubr.msk.bf16.vlgmr.msra.gmra.mxu1 %vm135_vm3, %v286_v63 }
 0x59b   :  { %1029 = vmatpush3.bf16.msra.mxu1 %v1308_v4  ;;  %1032 = vmatprep.mubr.msk.bf16.mxu1 %vm1227_vm0, %v1226_v0 }
 0x59c   :  { %1030 = vmatprep.subr.bf16.mxu1 %v1226_v0 }
 0x59f   :  { %1031 = vmatpush3.bf16.msra.mxu1 %v1323_v12 }
 0x5a0   :  { %1044 = vmatprep.subr.bf16.mxu1 %v1226_v0 }
 0x65a   :  { %v324_v1 = vpop.f32.mrf.mxu1 }
 0x65b   :  { %v331_v2 = vrot.slane %v324_v1, 4 }
 0x65c   :  { %v1018_v3 = vpop.f32.mrf.mxu1 }
 0x65d   :  { %v333_v5 = vadd.f32 %v331_v2, %v1342_v16 }
 0x65e   :  { %v327_v6 = vpop.f32.mrf.mxu1 }
 0x65f   :  { %1103 = vtanh.f32 %v333_v5  ;;  %v942_v9 = vmul.f32 -1.442695, %v333_v5 }
 0x660   :  { %v1019_v7 = vpop.f32.mrf.mxu1 }
 0x661   :  { %1105 = vpow2.f32 %v942_v9 }
 0x66c   :  { %v1104_v8 = vpop.eup %1103 }
 0x66d   :  { %346 = vrot.lane.b32.xlu0 %v1104_v8, %s1229_s0 }
 0x66e   :  { %v1106_v10 = vpop.eup %1105 }
 0x66f   :  { %v337_v11 = vadd.f32 1.0, %v1106_v10 }
 0x671   :  { %1107 = vrcp.f32 %v337_v11 }
 0x67e   :  { %v1108_v13 = vpop.eup %1107 }
 0x67f   :  { %v344_v18 = vmul.f32 %v1108_v13, %v342_v17 }
 0x6df   :  { %v347_v14 = vpop.permute.xlu0 %346 }
 0x6e0   :  { %v349_v15 = vmul.f32 %v1108_v13, %v347_v14 }
 0x6e2   :  { %351 = vrot.lane.b32.xlu1 %v349_v15, %s1230_s1 }
 0x754   :  { %v352_v19 = vpop.permute.xlu1 %351 }
 0x755   :  { %v354_v20 = vadd.f32 %v352_v19, %v344_v18 }
 0x757   :  { %1109 = vtanh.f32 %v354_v20  ;;  %v421_v41 = vrot.slane %v354_v20, 6 }
 0x764   :  { %v1110_v22 = vpop.eup %1109 }
 0x765   :  { %357 = vrot.lane.b32.xlu0 %v1110_v22, %s1229_s0 }
 0x7d7   :  { %v358_v23 = vpop.permute.xlu0 %357 }
 0x7d8   :  { %v360_v24 = vmul.f32 %v1108_v13, %v358_v23 }
 0x7da   :  { %v361_v25 = vpack.c.bf16 %v360_v24, %v360_v24 }
 0x7dc   :  { %v363_v26 = vrot.slane %v361_v25, 2 }
 0x7de   :  { %364 = vrot.lane.b32.xlu1 %v363_v26, %s1230_s1 }
 0x850   :  { %v365_v27 = vpop.permute.xlu1 %364 }
 0x851   :  { %1025 = vmatmul.mubr.msk.bf16.vlgmr.msra.gmra.mxu0 %vm135_vm3, %v365_v27 }
 0x852   :  { %1037 = vmatpush3.bf16.msra.mxu0 %v1308_v4  ;;  %1040 = vmatprep.mubr.msk.bf16.mxu0 %vm1227_vm0, %v1226_v0 }
 0x853   :  { %1038 = vmatprep.subr.bf16.mxu0 %v1226_v0 }
 0x856   :  { %1039 = vmatpush3.bf16.msra.mxu0 %v1323_v12 }
 0x857   :  { %1052 = vmatprep.subr.bf16.mxu0 %v1226_v0 }
 0x911   :  { %v403_v28 = vpop.f32.mrf.mxu0 }
 0x912   :  { %v410_v29 = vrot.slane %v403_v28, 2 }
 0x913   :  { %v1026_v30 = vpop.f32.mrf.mxu0 }
 0x914   :  { %v412_v31 = vadd.f32 %v410_v29, %v1342_v16 }
 0x915   :  { %v406_v32 = vpop.f32.mrf.mxu0 }
 0x916   :  { %1111 = vtanh.f32 %v412_v31  ;;  %v944_v35 = vmul.f32 -1.442695, %v412_v31 }
 0x917   :  { %v1027_v33 = vpop.f32.mrf.mxu0 }
 0x918   :  { %1113 = vpow2.f32 %v944_v35 }
 0x923   :  { %v1112_v34 = vpop.eup %1111 }
 0x924   :  { %425 = vrot.lane.b32.xlu0 %v1112_v34, %s1229_s0 }
 0x925   :  { %v1114_v36 = vpop.eup %1113 }
 0x926   :  { %v416_v37 = vadd.f32 1.0, %v1114_v36 }
 0x928   :  { %1115 = vrcp.f32 %v416_v37 }
 0x935   :  { %v1116_v38 = vpop.eup %1115 }
 0x936   :  { %v423_v42 = vmul.f32 %v1116_v38, %v421_v41 }
 0x996   :  { %v426_v39 = vpop.permute.xlu0 %425 }
 0x997   :  { %v428_v40 = vmul.f32 %v1116_v38, %v426_v39 }
 0x999   :  { %430 = vrot.lane.b32.xlu1 %v428_v40, %s1230_s1 }
 0xa0b   :  { %v431_v43 = vpop.permute.xlu1 %430 }
 0xa0c   :  { %v433_v16 = vadd.f32 %v431_v43, %v423_v42 }
 0xa0e   :  { %1117 = vtanh.f32 %v433_v16  ;;  %v497_v62 = vrot.slane %v433_v16, 6 }
 0xa1b   :  { %v1118_v44 = vpop.eup %1117 }
 0xa1c   :  { %436 = vrot.lane.b32.xlu0 %v1118_v44, %s1229_s0 }
 0xa8e   :  { %v437_v45 = vpop.permute.xlu0 %436 }
 0xa8f   :  { %v439_v46 = vmul.f32 %v1116_v38, %v437_v45 }
 0xa91   :  { %v440_v47 = vpack.c.bf16 %v439_v46, %v439_v46 }
 0xa93   :  { %v442_v48 = vrot.slane %v440_v47, 3 }
 0xa95   :  { %443 = vrot.lane.b32.xlu1 %v442_v48, %s1230_s1 }
 0xb07   :  { %v444_v49 = vpop.permute.xlu1 %443 }
 0xb08   :  { %1033 = vmatmul.mubr.msk.bf16.vlgmr.msra.gmra.mxu1 %vm135_vm3, %v444_v49 }
 0xb09   :  { %1045 = vmatpush3.bf16.msra.mxu1 %v1308_v4  ;;  %1048 = vmatprep.mubr.msk.bf16.mxu1 %vm1227_vm0, %v1226_v0 }
 0xb0a   :  { %1046 = vmatprep.subr.bf16.mxu1 %v1226_v0 }
 0xb0d   :  { %1047 = vmatpush3.bf16.msra.mxu1 %v1323_v12 }
 0xb0e   :  { %1060 = vmatprep.subr.bf16.mxu1 %v1226_v0 }
 0xbc8   :  { %v482_v50 = vpop.f32.mrf.mxu1 }
 0xbc9   :  { %v488_v51 = vadd.f32 %v482_v50, %v1345_v21 }
 0xbca   :  { %v1034_v52 = vpop.f32.mrf.mxu1 }
 0xbcb   :  { %1119 = vtanh.f32 %v488_v51  ;;  %v946_v56 = vmul.f32 -1.442695, %v488_v51 }
 0xbcc   :  { %v485_v53 = vpop.f32.mrf.mxu1 }
 0xbcd   :  { %1121 = vpow2.f32 %v946_v56 }
 0xbce   :  { %v1035_v54 = vpop.f32.mrf.mxu1 }
 0xbd8   :  { %v1120_v55 = vpop.eup %1119 }
 0xbd9   :  { %501 = vrot.lane.b32.xlu0 %v1120_v55, %s1229_s0 }
 0xbda   :  { %v1122_v57 = vpop.eup %1121 }
 0xbdb   :  { %v492_v58 = vadd.f32 1.0, %v1122_v57 }
 0xbdd   :  { %1123 = vrcp.f32 %v492_v58 }
 0xbea   :  { %v1124_v59 = vpop.eup %1123 }
 0xbeb   :  { %v499_v63 = vmul.f32 %v1124_v59, %v497_v62 }
 0xc4b   :  { %v502_v60 = vpop.permute.xlu0 %501 }
 0xc4c   :  { %v504_v61 = vmul.f32 %v1124_v59, %v502_v60 }
 0xc4e   :  { %506 = vrot.lane.b32.xlu1 %v504_v61, %s1230_s1 }
 0xcc0   :  { %v507_v1 = vpop.permute.xlu1 %506 }
 0xcc1   :  { %v509_v2 = vadd.f32 %v507_v1, %v499_v63 }
 0xcc3   :  { %1125 = vtanh.f32 %v509_v2  ;;  %v575_v23 = vrot.slane %v509_v2, 6 }
 0xcd0   :  { %v1126_v3 = vpop.eup %1125 }
 0xcd1   :  { %512 = vrot.lane.b32.xlu0 %v1126_v3, %s1229_s0 }
 0xd43   :  { %v513_v5 = vpop.permute.xlu0 %512 }
 0xd44   :  { %v515_v6 = vmul.f32 %v1124_v59, %v513_v5 }
 0xd46   :  { %v516_v7 = vpack.c.bf16 %v515_v6, %v515_v6 }
 0xd48   :  { %518 = vrot.lane.b32.xlu1 %v516_v7, %s1230_s1 }
 0xdba   :  { %v519_v8 = vpop.permute.xlu1 %518 }
 0xdbb   :  { %1041 = vmatmul.mubr.msk.bf16.vlgmr.msra.gmra.mxu0 %vm135_vm3, %v519_v8 }
 0xdbc   :  { %1053 = vmatpush3.bf16.msra.mxu0 %v1308_v4  ;;  %1056 = vmatprep.mubr.msk.bf16.mxu0 %vm1227_vm0, %v1226_v0 }
 0xdbd   :  { %1054 = vmatprep.subr.bf16.mxu0 %v1226_v0 }
 0xdc0   :  { %1055 = vmatpush3.bf16.msra.mxu0 %v1323_v12 }
 0xdc1   :  { %1068 = vmatprep.subr.bf16.mxu0 %v1226_v0 }
 0xe7b   :  { %v557_v9 = vpop.f32.mrf.mxu0 }
 0xe7c   :  { %v564_v10 = vrot.slane %v557_v9, 6  ;;  %v755_v9 = vld [vmem:[%s1466_s4 + $0x10] sm:$0xff] }
 0xe7d   :  { %v1042_v11 = vpop.f32.mrf.mxu0 }
 0xe7e   :  { %v566_v13 = vadd.f32 %v564_v10, %v1345_v21  ;;  %v756_v10 = vld [vmem:[%s1466_s4 + $0x18] sm:$0xff]  ;;  %v753_v11 = vld [vmem:[%s1466_s4] sm:$0xff] }
 0xe7f   :  { %v560_v14 = vpop.f32.mrf.mxu0 }
 0xe80   :  { %1127 = vtanh.f32 %v566_v13  ;;  %v948_v4 = vmul.f32 -1.442695, %v566_v13  ;;  %v758_v13 = vpack.c.bf16 %v756_v10, %v755_v9  ;;  %v754_v14 = vld [vmem:[%s1466_s4 + $0x8] sm:$0xff] }
 0xe81   :  { %v1043_v15 = vpop.f32.mrf.mxu0 }
 0xe82   :  { %1129 = vpow2.f32 %v948_v4  ;;  %v757_v15 = vpack.c.bf16 %v754_v14, %v753_v11  ;;  %v817_v4 = vld [vmem:[%s1468_s6 + $0x10] sm:$0xff] }
 0xe8d   :  { %v1128_v17 = vpop.eup %1127 }
 0xe8e   :  { %579 = vrot.lane.b32.xlu0 %v1128_v17, %s1229_s0 }
 0xe8f   :  { %v1130_v18 = vpop.eup %1129 }
 0xe90   :  { %v570_v19 = vadd.f32 1.0, %v1130_v18  ;;  %v818_v18 = vld [vmem:[%s1468_s6 + $0x18] sm:$0xff] }
 0xe92   :  { %1131 = vrcp.f32 %v570_v19  ;;  %v820_v19 = vpack.c.bf16 %v818_v18, %v817_v4 }
 0xe9f   :  { %v1132_v20 = vpop.eup %1131 }
 0xea0   :  { %v577_v24 = vmul.f32 %v1132_v20, %v575_v23 }
 0xf00   :  { %v580_v12 = vpop.permute.xlu0 %579 }
 0xf01   :  { %v582_v22 = vmul.f32 %v1132_v20, %v580_v12 }
 0xf03   :  { %584 = vrot.lane.b32.xlu1 %v582_v22, %s1230_s1 }
 0xf75   :  { %v585_v25 = vpop.permute.xlu1 %584 }
 0xf76   :  { %v587_v26 = vadd.f32 %v585_v25, %v577_v24  ;;  %v815_v25 = vld [vmem:[%s1468_s6] sm:$0xff] }
 0xf78   :  { %1133 = vtanh.f32 %v587_v26  ;;  %v654_v45 = vrot.slane %v587_v26, 6  ;;  %v816_v26 = vld [vmem:[%s1468_s6 + $0x8] sm:$0xff]  ;;  %s1232_s6 = smov 124  }
 0xf85   :  { %v1134_v27 = vpop.eup %1133 }
 0xf86   :  { %590 = vrot.lane.b32.xlu0 %v1134_v27, %s1229_s0  ;;  %v819_v27 = vpack.c.bf16 %v816_v26, %v815_v25 }
 0xff8   :  { %v591_v28 = vpop.permute.xlu0 %590 }
 0xff9   :  { %v593_v29 = vmul.f32 %v1132_v20, %v591_v28  ;;  %v953_v28 = vld [vmem:[#allocation4] ss:$0 sm:$0xff] }
 0xffb   :  { %v594_v30 = vpack.c.bf16 %v593_v29, %v593_v29 }
 0xffd   :  { %v596_v31 = vrot.slane %v594_v30, 1 }
 0xfff   :  { %597 = vrot.lane.b32.xlu1 %v596_v31, %s1230_s1 }
0x1071   :  { %v598_v32 = vpop.permute.xlu1 %597 }
0x1072   :  { %1049 = vmatmul.mubr.msk.bf16.vlgmr.msra.gmra.mxu1 %vm135_vm3, %v598_v32 }
0x1073   :  { %1064 = vmatprep.mubr.msk.bf16.mxu1 %vm1227_vm0, %v1226_v0  ;;  %1061 = vmatpush3.bf16.msra.mxu1 %v758_v13 }
0x1074   :  { %1062 = vmatprep.subr.bf16.mxu1 %v1226_v0 }
0x1077   :  { %1063 = vmatpush3.bf16.msra.mxu1 %v757_v15 }
0x1132   :  { %v636_v33 = vpop.f32.mrf.mxu1 }
0x1133   :  { %v643_v34 = vrot.slane %v636_v33, 4 }
0x1134   :  { %v1050_v35 = vpop.f32.mrf.mxu1 }
0x1135   :  { %v645_v36 = vadd.f32 %v643_v34, %v1345_v21 }
0x1136   :  { %v639_v37 = vpop.f32.mrf.mxu1 }
0x1137   :  { %1135 = vtanh.f32 %v645_v36  ;;  %v950_v40 = vmul.f32 -1.442695, %v645_v36  ;;  %v955_v36 = vld [vmem:[#allocation6] ss:$0 sm:$0xff] }
0x1138   :  { %v1051_v38 = vpop.f32.mrf.mxu1 }
0x1139   :  { %1137 = vpow2.f32 %v950_v40 }
0x1144   :  { %v1136_v39 = vpop.eup %1135 }
0x1145   :  { %658 = vrot.lane.b32.xlu0 %v1136_v39, %s1229_s0 }
0x1146   :  { %v1138_v41 = vpop.eup %1137 }
0x1147   :  { %v649_v42 = vadd.f32 1.0, %v1138_v41 }
0x1149   :  { %1139 = vrcp.f32 %v649_v42 }
0x1156   :  { %v1140_v43 = vpop.eup %1139 }
0x1157   :  { %v656_v46 = vmul.f32 %v1140_v43, %v654_v45 }
0x11b7   :  { %v659_v16 = vpop.permute.xlu0 %658 }
0x11b8   :  { %v661_v44 = vmul.f32 %v1140_v43, %v659_v16 }
0x11ba   :  { %663 = vrot.lane.b32.xlu1 %v661_v44, %s1230_s1 }
0x122c   :  { %v664_v47 = vpop.permute.xlu1 %663 }
0x122d   :  { %v666_v48 = vadd.f32 %v664_v47, %v656_v46 }
0x122f   :  { %1141 = vtanh.f32 %v666_v48  ;;  %v733_v6 = vrot.slane %v666_v48, 6 }
0x123c   :  { %v1142_v49 = vpop.eup %1141 }
0x123d   :  { %669 = vrot.lane.b32.xlu0 %v1142_v49, %s1229_s0 }
0x12af   :  { %v670_v50 = vpop.permute.xlu0 %669 }
0x12b0   :  { %v672_v51 = vmul.f32 %v1140_v43, %v670_v50 }
0x12b2   :  { %v673_v52 = vpack.c.bf16 %v672_v51, %v672_v51 }
0x12b4   :  { %v675_v53 = vrot.slane %v673_v52, 2 }
0x12b6   :  { %676 = vrot.lane.b32.xlu1 %v675_v53, %s1230_s1 }
0x1328   :  { %v677_v54 = vpop.permute.xlu1 %676 }
0x1329   :  { %1057 = vmatmul.mubr.msk.bf16.vlgmr.msra.gmra.mxu0 %vm135_vm3, %v677_v54 }
0x132a   :  { %1072 = vmatprep.mubr.msk.bf16.mxu0 %vm1227_vm0, %v1226_v0  ;;  %1069 = vmatpush3.bf16.msra.mxu0 %v820_v19 }
0x132b   :  { %1070 = vmatprep.subr.bf16.mxu0 %v1226_v0  ;;  %v891_v0 = vld [vmem:[%s1470_s8] sm:$0x3]  ;;  %s1233_s8 = smov 8  }
0x132e   :  { %1071 = vmatpush3.bf16.msra.mxu0 %v819_v27 }
0x13e9   :  { %v715_v55 = vpop.f32.mrf.mxu0 }
0x13ea   :  { %v722_v56 = vrot.slane %v715_v55, 2 }
0x13eb   :  { %v1058_v57 = vpop.f32.mrf.mxu0 }
0x13ec   :  { %v724_v58 = vadd.f32 %v722_v56, %v1345_v21 }
0x13ed   :  { %v718_v59 = vpop.f32.mrf.mxu0 }
0x13ee   :  { %1143 = vtanh.f32 %v724_v58  ;;  %v952_v62 = vmul.f32 -1.442695, %v724_v58 }
0x13ef   :  { %v1059_v60 = vpop.f32.mrf.mxu0 }
0x13f0   :  { %1145 = vpow2.f32 %v952_v62 }
0x13fb   :  { %v1144_v61 = vpop.eup %1143 }
0x13fc   :  { %737 = vrot.lane.b32.xlu0 %v1144_v61, %s1229_s0 }
0x13fd   :  { %v1146_v63 = vpop.eup %1145 }
0x13fe   :  { %v728_v1 = vadd.f32 1.0, %v1146_v63 }
0x1400   :  { %1147 = vrcp.f32 %v728_v1  ;;  %v902_v1 = vmul.f32 -0.5, %v891_v0 }
0x140d   :  { %v1148_v2 = vpop.eup %1147 }
0x140e   :  { %v735_v7 = vmul.f32 %v1148_v2, %v733_v6 }
0x146e   :  { %v738_v3 = vpop.permute.xlu0 %737 }
0x146f   :  { %v740_v5 = vmul.f32 %v1148_v2, %v738_v3 }
0x1471   :  { %742 = vrot.lane.b32.xlu1 %v740_v5, %s1230_s1 }
0x14e3   :  { %v743_v8 = vpop.permute.xlu1 %742 }
0x14e4   :  { %v745_v21 = vadd.f32 %v743_v8, %v735_v7 }
0x14e6   :  { %1149 = vtanh.f32 %v745_v21 }
0x14f3   :  { %v1150_v17 = vpop.eup %1149 }
0x14f4   :  { %748 = vrot.lane.b32.xlu0 %v1150_v17, %s1229_s0 }
0x14f8   :  { %893 = vrot.lane.b32.xlu0 %v891_v0, %s1231_s30 }
0x1566   :  { %v749_v20 = vpop.permute.xlu0 %748 }
0x1567   :  { %v751_v12 = vmul.f32 %v1148_v2, %v749_v20  ;;  %v903_v2 = vmul.f32 %v902_v1, %v891_v0 }
0x1569   :  { %v752_v22 = vpack.c.bf16 %v751_v12, %v751_v12 }
0x156a   :  { %v894_v55 = vpop.permute.xlu0 %893 }
0x156b   :  { %v767_v23 = vrot.slane %v752_v22, 3 }
0x156d   :  { %768 = vrot.lane.b32.xlu1 %v767_v23, %s1230_s1 }
0x15df   :  { %v769_v24 = vpop.permute.xlu1 %768 }
0x15e0   :  { %1065 = vmatmul.mubr.msk.bf16.vlgmr.msra.gmra.mxu1 %vm135_vm3, %v769_v24 }
0x16a0   :  { %v807_v29 = vpop.f32.mrf.mxu1 }
0x16a1   :  { %v808_v30 = vadd.f32 %v953_v28, %v807_v29 }
0x16a2   :  { %v1066_v31 = vpop.f32.mrf.mxu1 }
0x16a3   :  { %v813_v32 = vmax.f32 %v808_v30, 0.0 }
0x16a4   :  { %v810_v33 = vpop.f32.mrf.mxu1 }
0x16a5   :  { %v814_v34 = vpack.c.bf16 %v813_v32, %v813_v32 }
0x16a6   :  { %v1067_v35 = vpop.f32.mrf.mxu1 }
0x16a7   :  { %1073 = vmatmul.mubr.msk.bf16.vlgmr.msra.gmra.mxu0 %vm135_vm3, %v814_v34 }
0x1767   :  { %v865_v37 = vpop.f32.mrf.mxu0 }
0x1768   :  { %v866_v38 = vadd.f32 %v955_v36, %v865_v37 }
0x1769   :  { %v1074_v39 = vpop.f32.mrf.mxu0 }
0x176a   :  { %v875_v40 = vand.u32 2147483647, %v866_v38  ;;  %v872_v52 = vmax.f32 %v866_v38, 0.0  ;;  %vm873_vm5 = vcmp.ne.f32.partialorder %v866_v38, %v866_v38 }
0x176b   :  { %v868_v41 = vpop.f32.mrf.mxu0 }
0x176c   :  { %v876_v42 = vsub.f32 0.0, %v875_v40 }
0x176d   :  { %v1075_v43 = vpop.f32.mrf.mxu0 }
0x176e   :  { %v877_v16 = vmul.f32 1.442695, %v876_v42 }
0x1770   :  { %1151 = vpow2.f32 %v877_v16 }
0x177d   :  { %v1152_v44 = vpop.eup %1151 }
0x177e   :  { %v879_v45 = vadd.f32 1.0, %v1152_v44  ;;  %v882_v46 = vmul.f32 -0.5, %v1152_v44  ;;  %v885_v48 = vand.u32 2147483647, %v1152_v44 }
0x1780   :  { %1153 = vlog2.f32 %v879_v45  ;;  %v883_v47 = vadd.f32 1.0, %v882_v46  ;;  %vm886_vm4 = vcmp.lt.f32.partialorder %v885_v48, 0.0004427343 }
0x1782   :  { %v884_v51 = vmul.f32 %v1152_v44, %v883_v47 }
0x178d   :  { %v1154_v49 = vpop.eup %1153 }
0x178e   :  { %v881_v50 = vmul.f32 0.6931472, %v1154_v49 }
0x1790   :  { %v887_v53 = vsel %vm886_vm4, %v884_v51, %v881_v50 }
0x1791   :  { %v888_v54 = vadd.f32 %v887_v53, %v872_v52 }
0x1793   :  { %v889_v56 = vsel %vm873_vm5, %v866_v38, %v888_v54 }
0x1794   :  { %v890_v57 = vadd.f32 1e-05, %v889_v56 }
0x1796   :  { %v896_v58 = vmul.f32 %v894_v55, %v890_v57  ;;  %1155 = vlog2.f32 %v890_v57 }
0x1797   :  { %1157 = vtanh.f32 %v866_v38 }
0x1798   :  { %898 = vrot.lane.b32.xlu0 %v896_v58, %s1232_s6 }
0x17a3   :  { %v1156_v59 = vpop.eup %1155 }
0x17a4   :  { %v905_v60 = vmul.f32 0.6931472, %v1156_v59  ;;  %v1158_v61 = vpop.eup %1157 }
0x17a5   :  { %v921_v21 = vsel %vm920_vm7, %v1158_v61, %v890_v57 }
0x17a6   :  { %907 = vrot.lane.b32.xlu1 %v905_v60, %s1232_s6 }
0x180a   :  { %v899_v62 = vpop.permute.xlu0 %898 }
0x180b   :  { %v901_v63 = vadd.f32 %v1158_v61, %v899_v62 }
0x180d   :  { %917 = vrot.lane.b32.xlu0 %v901_v63, %s1233_s8 }
0x1818   :  { %v908_v3 = vpop.permute.xlu1 %907 }
0x1819   :  { %v910_v5 = vsub.f32 %v903_v2, %v908_v3 }
0x181b   :  { %v957_v6 = vadd.f32 -0.9189385, %v910_v5 }
0x181d   :  { %v913_v7 = vsel %vm912_vm6, %v957_v6, 0.0 }
0x181e   :  { %914 = vadd.xlane.f32.xlu1 %v913_v7 }
0x187f   :  { %v918_v8 = vpop.permute.xlu0 %917 }
0x1880   :  { %v922_v9 = vsel %vm80_vm2, %v921_v21, %v918_v8 }
0x18a7   :  { %v915_v10 = vpop.xlane.xlu1 %914 }
0x18a8   :  { %v924_v11 = vsel %vm923_vm8, %v922_v9, %v915_v10 }
0x18a9   :  { %v926_v13 = vsel %vm925_vm9, %v924_v11, 0.0 }
0x18aa   :  { %v928_v14 = vsel %vm927_vm10, %v926_v13, 0.0 }
0x18ab   :  { %929 = vst [vmem:[%s1471_s9] sm:$0xff] %v928_v14 }
0x18ac   :  { %934 = vsyncpa [#allocation3], 1 }
0x18ad   :  { %935 = vsyncpa [#allocation5], 1 }

</bundles_post_ra>
